<compile_context>
chip_gen: v5e
topology: v5e:2x2
jax: 0.10.0
libtpu: 0.0.40
codegen_flags: <defaults>
</compile_context>

<pallas_src>
import jax
import jax.numpy as jnp
from jax.experimental import pallas as pl
from jax.experimental.pallas import tpu as pltpu


# ----------------------------------------------------------------------------
# Kernel
# ----------------------------------------------------------------------------
def pos_learned_encoding_kernel(
    lens_ref,                                   # SMEM scalar-prefetch: (B,) int32
    lang_ref, frames_ref, actions_ref,          # VMEM blocks (1, T_*, D)
    emb_hbm,                                    # HBM ref (max_pos, D), memory_space=ANY
    lang_out_ref, frames_out_ref, actions_out_ref,
    emb_lang_buf, emb_fa_buf, sem,              # scratch: VMEM, VMEM, DMA sems (2,)
):
    b = pl.program_id(0)
    start = lens_ref[b]                         # per-batch language length (row offset)

    t_lang = emb_lang_buf.shape[0]
    t_fa = emb_fa_buf.shape[0]                  # max(T_frames, T_actions)
    t_frames = frames_ref.shape[1]
    t_actions = actions_ref.shape[1]

    # Gather the two contiguous embedding-row runs via DMA (HBM -> VMEM).
    cp_lang = pltpu.make_async_copy(
        emb_hbm.at[pl.ds(0, t_lang), :], emb_lang_buf, sem.at[0])
    cp_fa = pltpu.make_async_copy(
        emb_hbm.at[pl.ds(start, t_fa), :], emb_fa_buf, sem.at[1])
    cp_lang.start()
    cp_fa.start()
    cp_lang.wait()
    cp_fa.wait()

    # Additive learned positional encoding (pure VPU work, lane-dense stores).
    lang_out_ref[0] = lang_ref[0] + emb_lang_buf[...]
    frames_out_ref[0] = frames_ref[0] + emb_fa_buf[0:t_frames, :]
    actions_out_ref[0] = actions_ref[0] + emb_fa_buf[0:t_actions, :]


# ----------------------------------------------------------------------------
# Wrapper
# ----------------------------------------------------------------------------
def pos_learned_encoding(emb, lang, frames, actions, lens_lang, lens_frames=None):
    """Functional equivalent of PosLearnedEncoding.forward.

    emb:      (max_pos, D) learned embedding table
    lang:     (B, T_lang, D)
    frames:   (B, T_frames, D)
    actions:  (B, T_actions, D)
    lens_lang: (B,) int — per-batch language lengths (embedding row offsets)
    lens_frames: unused (kept for signature parity with the PyTorch module)
    """
    del lens_frames  # unused by the original forward as well
    B, T_l, D = lang.shape
    _, T_f, _ = frames.shape
    _, T_a, _ = actions.shape
    T_fa = max(T_f, T_a)
    lens_lang = lens_lang.astype(jnp.int32)

    grid_spec = pltpu.PrefetchScalarGridSpec(
        num_scalar_prefetch=1,
        grid=(B,),
        in_specs=[
            pl.BlockSpec((1, T_l, D), lambda b, lens: (b, 0, 0)),
            pl.BlockSpec((1, T_f, D), lambda b, lens: (b, 0, 0)),
            pl.BlockSpec((1, T_a, D), lambda b, lens: (b, 0, 0)),
            pl.BlockSpec(memory_space=pl.ANY),          # emb table stays in HBM
        ],
        out_specs=(
            pl.BlockSpec((1, T_l, D), lambda b, lens: (b, 0, 0)),
            pl.BlockSpec((1, T_f, D), lambda b, lens: (b, 0, 0)),
            pl.BlockSpec((1, T_a, D), lambda b, lens: (b, 0, 0)),
        ),
        scratch_shapes=[
            pltpu.VMEM((T_l, D), emb.dtype),            # lang positional rows
            pltpu.VMEM((T_fa, D), emb.dtype),           # frames/actions positional rows
            pltpu.SemaphoreType.DMA((2,)),
        ],
    )

    out_shape = (
        jax.ShapeDtypeStruct(lang.shape, lang.dtype),
        jax.ShapeDtypeStruct(frames.shape, frames.dtype),
        jax.ShapeDtypeStruct(actions.shape, actions.dtype),
    )

    return pl.pallas_call(
        pos_learned_encoding_kernel,
        grid_spec=grid_spec,
        out_shape=out_shape,
        compiler_params=pltpu.CompilerParams(
            dimension_semantics=("parallel",)),         # batch splits across v7x's 2 TCs
    )(lens_lang, lang, frames, actions, emb)


# ----------------------------------------------------------------------------
if __name__ == "__main__":
    B, D = 2, 128                       # lane-dense hidden dim (multiple of 128)
    T_LANG, T_FRAMES, T_ACTIONS = 16, 8, 8
    MAX_POS = 64
    INIT_RANGE = 0.1

    key = jax.random.PRNGKey(0)
    k_emb, k_lang, k_frames, k_actions = jax.random.split(key, 4)

    emb = jax.random.uniform(k_emb, (MAX_POS, D), jnp.float32,
                             minval=-INIT_RANGE, maxval=INIT_RANGE)
    lang = jax.random.normal(k_lang, (B, T_LANG, D), jnp.float32)
    frames = jax.random.normal(k_frames, (B, T_FRAMES, D), jnp.float32)
    actions = jax.random.normal(k_actions, (B, T_ACTIONS, D), jnp.float32)
    lens_lang = jnp.array([5, 13], jnp.int32)                  # per-batch lang lengths
    lens_frames = jnp.array([T_FRAMES, T_FRAMES], jnp.int32)   # unused (as in PyTorch)

    out_lang, out_frames, out_actions = jax.block_until_ready(
        pos_learned_encoding(emb, lang, frames, actions, lens_lang, lens_frames))

    # Pure-JAX reference (gather semantics of nn.Embedding).
    ref_lang = lang + emb[jnp.arange(T_LANG)][None, :, :]
    ref_frames = frames + emb[lens_lang[:, None] + jnp.arange(T_FRAMES)[None, :]]
    ref_actions = actions + emb[lens_lang[:, None] + jnp.arange(T_ACTIONS)[None, :]]

    assert out_lang.shape == lang.shape
    assert out_frames.shape == frames.shape
    assert out_actions.shape == actions.shape
    assert bool(jnp.allclose(out_lang, ref_lang, atol=1e-6))
    assert bool(jnp.allclose(out_frames, ref_frames, atol=1e-6))
    assert bool(jnp.allclose(out_actions, ref_actions, atol=1e-6))
    print("KERNEL_OK")
</pallas_src>

<mosaic_0001>
module attributes {stable_mosaic.version = 11 : i64} {
  func.func @pos_learned_encoding_kernel(%arg0: i32, %arg1: memref<2xi32, #tpu.memory_space<smem>>, %arg2: memref<1x16x128xf32, #tpu.memory_space<vmem>>, %arg3: memref<1x8x128xf32, #tpu.memory_space<vmem>>, %arg4: memref<1x8x128xf32, #tpu.memory_space<vmem>>, %arg5: memref<64x128xf32, #tpu.memory_space<any>>, %arg6: memref<1x16x128xf32, #tpu.memory_space<vmem>>, %arg7: memref<1x8x128xf32, #tpu.memory_space<vmem>>, %arg8: memref<1x8x128xf32, #tpu.memory_space<vmem>>, %arg9: memref<16x128xf32, #tpu.memory_space<vmem>>, %arg10: memref<8x128xf32, #tpu.memory_space<vmem>>, %arg11: memref<2x!tpu.dma_semaphore, #tpu.memory_space<semaphore_mem>>) attributes {dimension_semantics = [#tpu.dimension_semantics<parallel>], iteration_bounds = array<i64: 2>, scalar_prefetch = 1 : i64, scratch_operands = 3 : i64, tpu.core_type = #tpu.core_type<tc>, window_params = [{transform_indices = @transform_0, window_bounds = array<i64: 1, 16, 128>}, {transform_indices = @transform_1, window_bounds = array<i64: 1, 8, 128>}, {transform_indices = @transform_2, window_bounds = array<i64: 1, 8, 128>}, {}, {transform_indices = @transform_4, window_bounds = array<i64: 1, 16, 128>}, {transform_indices = @transform_5, window_bounds = array<i64: 1, 8, 128>}, {transform_indices = @transform_6, window_bounds = array<i64: 1, 8, 128>}]} {
    %0 = arith.index_cast %arg0 : i32 to index
    %1 = memref.load %arg1[%0] : memref<2xi32, #tpu.memory_space<smem>>
    %c0_i32 = arith.constant 0 : i32
    %c0_i32_0 = arith.constant 0 : i32
    %c0_i32_1 = arith.constant 0 : i32
    %2 = tpu.memref_slice %arg5[%c0_i32_0, %c0_i32_1] : memref<64x128xf32, #tpu.memory_space<any>> -> memref<16x128xf32, #tpu.memory_space<any>>
    %3 = tpu.memref_slice %arg11[%c0_i32] : memref<2x!tpu.dma_semaphore, #tpu.memory_space<semaphore_mem>> -> memref<1x!tpu.dma_semaphore, #tpu.memory_space<semaphore_mem>>
    %4 = tpu.memref_squeeze %3 : memref<1x!tpu.dma_semaphore, #tpu.memory_space<semaphore_mem>> -> memref<!tpu.dma_semaphore, #tpu.memory_space<semaphore_mem>>
    tpu.enqueue_dma source(%2 : memref<16x128xf32, #tpu.memory_space<any>>) target(%arg9 : memref<16x128xf32, #tpu.memory_space<vmem>>) target_semaphore(%4 : memref<!tpu.dma_semaphore, #tpu.memory_space<semaphore_mem>>)
    %c1_i32 = arith.constant 1 : i32
    %c0_i32_2 = arith.constant 0 : i32
    %5 = tpu.memref_slice %arg5[%1, %c0_i32_2] : memref<64x128xf32, #tpu.memory_space<any>> -> memref<8x128xf32, #tpu.memory_space<any>>
    %6 = tpu.memref_slice %arg11[%c1_i32] : memref<2x!tpu.dma_semaphore, #tpu.memory_space<semaphore_mem>> -> memref<1x!tpu.dma_semaphore, #tpu.memory_space<semaphore_mem>>
    %7 = tpu.memref_squeeze %6 : memref<1x!tpu.dma_semaphore, #tpu.memory_space<semaphore_mem>> -> memref<!tpu.dma_semaphore, #tpu.memory_space<semaphore_mem>>
    tpu.enqueue_dma source(%5 : memref<8x128xf32, #tpu.memory_space<any>>) target(%arg10 : memref<8x128xf32, #tpu.memory_space<vmem>>) target_semaphore(%7 : memref<!tpu.dma_semaphore, #tpu.memory_space<semaphore_mem>>)
    %c0_i32_3 = arith.constant 0 : i32
    %c0_i32_4 = arith.constant 0 : i32
    %c0_i32_5 = arith.constant 0 : i32
    %8 = tpu.memref_slice %arg5[%c0_i32_4, %c0_i32_5] : memref<64x128xf32, #tpu.memory_space<any>> -> memref<16x128xf32, #tpu.memory_space<any>>
    %9 = tpu.memref_slice %arg11[%c0_i32_3] : memref<2x!tpu.dma_semaphore, #tpu.memory_space<semaphore_mem>> -> memref<1x!tpu.dma_semaphore, #tpu.memory_space<semaphore_mem>>
    %10 = tpu.memref_squeeze %9 : memref<1x!tpu.dma_semaphore, #tpu.memory_space<semaphore_mem>> -> memref<!tpu.dma_semaphore, #tpu.memory_space<semaphore_mem>>
    tpu.wait_dma2 semaphore(%10 : memref<!tpu.dma_semaphore, #tpu.memory_space<semaphore_mem>>) src(%8 : memref<16x128xf32, #tpu.memory_space<any>>) dst(%arg9 : memref<16x128xf32, #tpu.memory_space<vmem>>)
    %c1_i32_6 = arith.constant 1 : i32
    %c0_i32_7 = arith.constant 0 : i32
    %11 = tpu.memref_slice %arg5[%1, %c0_i32_7] : memref<64x128xf32, #tpu.memory_space<any>> -> memref<8x128xf32, #tpu.memory_space<any>>
    %12 = tpu.memref_slice %arg11[%c1_i32_6] : memref<2x!tpu.dma_semaphore, #tpu.memory_space<semaphore_mem>> -> memref<1x!tpu.dma_semaphore, #tpu.memory_space<semaphore_mem>>
    %13 = tpu.memref_squeeze %12 : memref<1x!tpu.dma_semaphore, #tpu.memory_space<semaphore_mem>> -> memref<!tpu.dma_semaphore, #tpu.memory_space<semaphore_mem>>
    tpu.wait_dma2 semaphore(%13 : memref<!tpu.dma_semaphore, #tpu.memory_space<semaphore_mem>>) src(%11 : memref<8x128xf32, #tpu.memory_space<any>>) dst(%arg10 : memref<8x128xf32, #tpu.memory_space<vmem>>)
    %c0 = arith.constant 0 : index
    %c0_8 = arith.constant 0 : index
    %c0_9 = arith.constant 0 : index
    %14 = vector.load %arg2[%c0, %c0_8, %c0_9] : memref<1x16x128xf32, #tpu.memory_space<vmem>>, vector<1x16x128xf32>
    %15 = vector.shape_cast %14 : vector<1x16x128xf32> to vector<16x128xf32>
    %c0_10 = arith.constant 0 : index
    %c0_11 = arith.constant 0 : index
    %16 = vector.load %arg9[%c0_10, %c0_11] : memref<16x128xf32, #tpu.memory_space<vmem>>, vector<16x128xf32>
    %17 = arith.addf %15, %16 : vector<16x128xf32>
    %c0_12 = arith.constant 0 : index
    %c0_13 = arith.constant 0 : index
    %c0_14 = arith.constant 0 : index
    %18 = vector.load %arg6[%c0_12, %c0_13, %c0_14] : memref<1x16x128xf32, #tpu.memory_space<vmem>>, vector<1x16x128xf32>
    %19 = vector.shape_cast %18 : vector<1x16x128xf32> to vector<16x128xf32>
    %20 = vector.shape_cast %17 : vector<16x128xf32> to vector<1x16x128xf32>
    tpu.vector_store %arg6[%c0_12, %c0_13, %c0_14], %20 {strides = array<i32>} : memref<1x16x128xf32, #tpu.memory_space<vmem>>, vector<1x16x128xf32>,
    %c0_15 = arith.constant 0 : index
    %c0_16 = arith.constant 0 : index
    %c0_17 = arith.constant 0 : index
    %21 = vector.load %arg3[%c0_15, %c0_16, %c0_17] : memref<1x8x128xf32, #tpu.memory_space<vmem>>, vector<1x8x128xf32>
    %22 = vector.shape_cast %21 : vector<1x8x128xf32> to vector<8x128xf32>
    %c0_18 = arith.constant 0 : index
    %c0_19 = arith.constant 0 : index
    %23 = vector.load %arg10[%c0_18, %c0_19] : memref<8x128xf32, #tpu.memory_space<vmem>>, vector<8x128xf32>
    %24 = arith.addf %22, %23 : vector<8x128xf32>
    %c0_20 = arith.constant 0 : index
    %c0_21 = arith.constant 0 : index
    %c0_22 = arith.constant 0 : index
    %25 = vector.load %arg7[%c0_20, %c0_21, %c0_22] : memref<1x8x128xf32, #tpu.memory_space<vmem>>, vector<1x8x128xf32>
    %26 = vector.shape_cast %25 : vector<1x8x128xf32> to vector<8x128xf32>
    %27 = vector.shape_cast %24 : vector<8x128xf32> to vector<1x8x128xf32>
    tpu.vector_store %arg7[%c0_20, %c0_21, %c0_22], %27 {strides = array<i32>} : memref<1x8x128xf32, #tpu.memory_space<vmem>>, vector<1x8x128xf32>,
    %c0_23 = arith.constant 0 : index
    %c0_24 = arith.constant 0 : index
    %c0_25 = arith.constant 0 : index
    %28 = vector.load %arg4[%c0_23, %c0_24, %c0_25] : memref<1x8x128xf32, #tpu.memory_space<vmem>>, vector<1x8x128xf32>
    %29 = vector.shape_cast %28 : vector<1x8x128xf32> to vector<8x128xf32>
    %c0_26 = arith.constant 0 : index
    %c0_27 = arith.constant 0 : index
    %30 = vector.load %arg10[%c0_26, %c0_27] : memref<8x128xf32, #tpu.memory_space<vmem>>, vector<8x128xf32>
    %31 = arith.addf %29, %30 : vector<8x128xf32>
    %c0_28 = arith.constant 0 : index
    %c0_29 = arith.constant 0 : index
    %c0_30 = arith.constant 0 : index
    %32 = vector.load %arg8[%c0_28, %c0_29, %c0_30] : memref<1x8x128xf32, #tpu.memory_space<vmem>>, vector<1x8x128xf32>
    %33 = vector.shape_cast %32 : vector<1x8x128xf32> to vector<8x128xf32>
    %34 = vector.shape_cast %31 : vector<8x128xf32> to vector<1x8x128xf32>
    tpu.vector_store %arg8[%c0_28, %c0_29, %c0_30], %34 {strides = array<i32>} : memref<1x8x128xf32, #tpu.memory_space<vmem>>, vector<1x8x128xf32>,
    return
  }
  func.func @transform_0(%arg0: i32, %arg1: memref<2xi32, #tpu.memory_space<smem>>) -> (i32, i32, i32) {
    %c0_i32 = arith.constant 0 : i32
    %c0_i32_0 = arith.constant 0 : i32
    %c0_i32_1 = arith.constant 0 : i32
    return %arg0, %c0_i32, %c0_i32_0 : i32, i32, i32
  }
  func.func @transform_1(%arg0: i32, %arg1: memref<2xi32, #tpu.memory_space<smem>>) -> (i32, i32, i32) {
    %c0_i32 = arith.constant 0 : i32
    %c0_i32_0 = arith.constant 0 : i32
    %c0_i32_1 = arith.constant 0 : i32
    return %arg0, %c0_i32, %c0_i32_0 : i32, i32, i32
  }
  func.func @transform_2(%arg0: i32, %arg1: memref<2xi32, #tpu.memory_space<smem>>) -> (i32, i32, i32) {
    %c0_i32 = arith.constant 0 : i32
    %c0_i32_0 = arith.constant 0 : i32
    %c0_i32_1 = arith.constant 0 : i32
    return %arg0, %c0_i32, %c0_i32_0 : i32, i32, i32
  }
  func.func @transform_4(%arg0: i32, %arg1: memref<2xi32, #tpu.memory_space<smem>>) -> (i32, i32, i32) {
    %c0_i32 = arith.constant 0 : i32
    %c0_i32_0 = arith.constant 0 : i32
    %c0_i32_1 = arith.constant 0 : i32
    return %arg0, %c0_i32, %c0_i32_0 : i32, i32, i32
  }
  func.func @transform_5(%arg0: i32, %arg1: memref<2xi32, #tpu.memory_space<smem>>) -> (i32, i32, i32) {
    %c0_i32 = arith.constant 0 : i32
    %c0_i32_0 = arith.constant 0 : i32
    %c0_i32_1 = arith.constant 0 : i32
    return %arg0, %c0_i32, %c0_i32_0 : i32, i32, i32
  }
  func.func @transform_6(%arg0: i32, %arg1: memref<2xi32, #tpu.memory_space<smem>>) -> (i32, i32, i32) {
    %c0_i32 = arith.constant 0 : i32
    %c0_i32_0 = arith.constant 0 : i32
    %c0_i32_1 = arith.constant 0 : i32
    return %arg0, %c0_i32, %c0_i32_0 : i32, i32, i32
  }
}

</mosaic_0001>

<bundles_post_ra>
// kernel: tpu_custom_call.1
= control target key start
LH: loop header
LB: loop body
LE: loop exit
PB: predicated region body
PF: predicated region fallthrough
CT: control target
= control target key end

     0   :  { %s1037_s27 = smov [#allocation6]   ;;  %s1376_s0 = inlined_call_operand.hbm [shape: s32[2], index: 0, kind: input, shape index: {}]   ;;  %s1377_s1 = inlined_call_operand.hbm [shape: f32[2,16,128], index: 1, kind: input, shape index: {}]   ;;  %s1378_s2 = inlined_call_operand.hbm [shape: f32[2,8,128], index: 2, kind: input, shape index: {}]   ;;  %s1379_s3 = inlined_call_operand.hbm [shape: f32[2,8,128], index: 3, kind: input, shape index: {}]   ;;  %s1380_s4 = inlined_call_operand.hbm [shape: f32[64,128], index: 4, kind: input, shape index: {}]   ;;  %s1381_s5 = inlined_call_operand.hbm [shape: f32[2,16,128], index: 5, kind: output, shape index: {0}]   ;;  %s1382_s6 = inlined_call_operand.hbm [shape: f32[2,8,128], index: 6, kind: output, shape index: {1}]   ;;  %s1383_s7 = inlined_call_operand.hbm [shape: f32[2,8,128], index: 7, kind: output, shape index: {2}]  }
   0x1   :  { %1392 = sst [smem:[#allocation34_spill]] %s1377_s1  ;;  %s14_s26 = sshll.u32 %s1376_s0, 4  ;;  %s15_s26 = int_to_ptr.hbm [resolvable:$true] %s14_s26 }
   0x2   :  { %1393 = sst [smem:[#allocation35_spill]] %s1378_s2 }
   0x3   :  { %17 = dma.hbm_to_smem %s15_s26, 16, %s1037_s27, [#allocation5] }
   0x4   :  { %999 = dma.done.wait [#allocation5], 16 }
   0x5   :  { %1000 = vsyncadd [#allocation5], 4294967280 }
   0x6   :  { %20 = sfence }
   0x7   :  { %21 = vsyncpa [#allocation8], 0 }
   0x8   :  { %23 = vsyncpa [#allocation8 + $0x1], 0 }
   0x9   :  { %24 = vsyncpa [#allocation11], 0 }
   0xa   :  { %26 = vsyncpa [#allocation11 + $0x1], 0 }
   0xb   :  { %27 = vsyncpa [#allocation9], 0 }
   0xc   :  { %29 = vsyncpa [#allocation9 + $0x1], 0 }
   0xd   :  { %30 = vsyncpa [#allocation15], 0 }
   0xe   :  { %32 = vsyncpa [#allocation15 + $0x1], 0  ;;  %s1087_s28 = smov 0   ;;  %s1089_s29 = smov 0  }
   0xf   :  { %s1091_s30 = smov 0   ;;  %s1093_s0 = smov 0  }
  0x10 LB: > { %1394 = sst [smem:[#allocation30_spill]] %s1031_s30  ;;  %s1108_s8 = sadd.s32 4294967295, %s1035_s0   ;;  %s1035_s0 = sphi %s1093_s0, %s1409_s0   ;;  %s1031_s30 = sphi %s1091_s30, %s1414_s30   ;;  %s1027_s29 = sphi %s1089_s29, %s1413_s29   ;;  %s1023_s28 = sphi %s1087_s28, %s1412_s28  }
  0x11   : > { %1395 = sst [smem:[#allocation31_spill]] %s1035_s0  ;;  %s1384_s9 = sadd.s32 4294967294, %s1035_s0  }
  0x12   : > { %s1112_s10 = sadd.s32 1, %s1035_s0   ;;  %s45_s11 = sadd.s32 1, %s1031_s30 }
  0x13   : > { %1396 = sst [smem:[#allocation32_spill]] %s1112_s10  ;;  %s42_s12 = ssub.s32 %s1035_s0, %s1112_s10 }
  0x14   : > { %p52_p0 = scmp.ne.s32.totalorder %s1031_s30, %s1027_s29  ;;  %p43_p1 = scmp.eq.s32.totalorder %s42_s12, 0 }
  0x15   : > { %p53_p2 = scmp.eq.s32.totalorder %s1035_s0, 0  ;;  %p58_p3 = scmp.ne.s32.totalorder %s1027_s29, %s1023_s28 }
  0x16   : > { %p59_p4 = scmp.eq.s32.totalorder %s1108_s8, 0  ;;  %p134_p7 = scmp.eq.s32.totalorder %s1108_s8, 1 }
  0x17   : > { %s1124_s13 = scalar_select %p43_p1, %s1031_s30, %s45_s11  }
  0x18   : > { %p54_p5 = por %p53_p2, %p52_p0  ;;  %p1126_p6 = por %p59_p4, %p58_p3 }
  0x19   : > { %1397 = sst [smem:[#allocation33_spill]] %s1124_s13  ;;  %p140_p8 = scmp.eq.s32.totalorder %s1384_s9, 1 }
  0x1a   : > { %p648_p9 = scmp.ge.s32.totalorder %s1035_s0, 2  ;;  %p708_p10 = scmp.lt.s32.totalorder %s1035_s0, 2 }
  0x1b   : > { %p1135_p11 = por %p134_p7, %p52_p0  ;;  %p1139_p12 = por %p140_p8, %p58_p3 }
  0x1c   : > { %s1144_s17 = sand.u32 1, %s1031_s30   ;;  %p1146_p13 = pnand %p708_p10, %p54_p5 }
  0x1d   : > { %s234_s19 = sand.u32 1, %s1035_s0   ;;  %s1385_s20 = sshll.u32 %s1144_s17, 3 }
  0x1e   : > { %s653_s21 = sshll.u32 %s1035_s0, 3  ;;  %s1402_s2 = sld [smem:[#allocation35_spill]] }
  0x1f   : > { %s238_s25 = scalar_lea.vmem [#allocation10], %s1385_s20  ;;  %s1158_s11 = scalar_lea.sflag [#allocation11], %s234_s19 }
  0x20   : > { %s246_s26 = sshll.u32 %s238_s25, 4  ;;  %p765_p1 = pneg %p1146_p13  ;;  %s247_s26 = int_to_ptr.vmem [resolvable:$true] %s246_s26 }
  0x24   : > { %s242_s24 = scalar_lea.hbm %s1402_s2, %s653_s21  ;;  %s768_s20 = scalar_lea.hbm %s1402_s2, 16 }
  0x25   : > { %s244_s27 = sshll.u32 %s242_s24, 4  ;;  %s245_s27 = int_to_ptr.hbm [resolvable:$true] %s244_s27 }
  0x26   : > { %s761_s12 = sshra.s32 %s245_s27, 4  ;;  %s762_s12 = int_to_ptr.hbm [resolvable:$true] %s761_s12 }
  0x27   : > { %s763_s9 = scalar_lea.hbm %s762_s12, 8  ;;  %p769_p4 = scmp.lt.s32.totalorder %s762_s12, %s1402_s2 }
  0x28   : > { %p764_p0 = scmp.ne.s32.totalorder %s762_s12, %s763_s9  ;;  %p770_p5 = scmp.lt.s32.totalorder %s768_s20, %s763_s9 }
  0x2a   : > { %p766_p2 = pnand %p765_p1, %p764_p0  ;;  %p771_p7 = por %p770_p5, %p769_p4 }
  0x2c   : > { %p767_p3 = pneg %p766_p2 }
  0x2e   : > { %p772_p8 = pnand %p771_p7, %p767_p3 }
  0x30   : > { %775 = shalt.err (!%p772_p8)
}
  0x31   : > { %694 = dma.hbm_to_vmem [thread:$0]  (!%p1146_p13), %s245_s27, 128, %s247_s26, %s1158_s11  }
  0x32   : > { %s1177_s23 = scalar_lea.hbm %s1379_s3, %s653_s21  ;;  %p656_p10 = scmp.ge.s32.totalorder %s1035_s0, 1 }
  0x33   : > { %p270_p0 = scmp.lt.s32.totalorder %s1035_s0, 3  ;;  %s649_s9 = sshll.u32 %s1144_s17, 4 }
  0x34   : > { %s674_s20 = sshll.u32 %s1035_s0, 4  ;;  %s1404_s1 = sld [smem:[#allocation34_spill]] }
  0x35   : > { %p1183_p2 = pnand %p656_p10, %p270_p0  ;;  %s216_s26 = scalar_lea.vmem [#allocation7], %s649_s9 }
  0x36   : > { %s224_s27 = sshll.u32 %s216_s26, 4  ;;  %s263_s21 = sshll.u32 %s1177_s23, 4  ;;  %s225_s27 = int_to_ptr.vmem [resolvable:$true] %s224_s27  ;;  %s264_s21 = int_to_ptr.hbm [resolvable:$true] %s263_s21 }
  0x37   : > { %s213_s19 = scalar_lea.sflag [#allocation8], %s1144_s17 }
  0x3a   : > { %s221_s2 = scalar_lea.hbm %s1404_s1, %s674_s20  ;;  %s798_s25 = scalar_lea.hbm %s1404_s1, 32 }
  0x3b   : > { %s222_s13 = sshll.u32 %s221_s2, 4  ;;  %s223_s13 = int_to_ptr.hbm [resolvable:$true] %s222_s13 }
  0x3c   : > { %s791_s22 = sshra.s32 %s223_s13, 4  ;;  %s792_s22 = int_to_ptr.hbm [resolvable:$true] %s791_s22 }
  0x3d   : > { %s793_s30 = scalar_lea.hbm %s792_s22, 16  ;;  %p799_p7 = scmp.lt.s32.totalorder %s792_s22, %s1404_s1 }
  0x3e   : > { %p794_p3 = scmp.ne.s32.totalorder %s792_s22, %s793_s30  ;;  %p800_p8 = scmp.lt.s32.totalorder %s798_s25, %s793_s30 }
  0x40   : > { %p796_p4 = pnand %p794_p3, %p765_p1  ;;  %p801_p10 = por %p800_p8, %p799_p7 }
  0x42   : > { %p797_p5 = pneg %p796_p4 }
  0x44   : > { %p802_p0 = pnand %p801_p10, %p797_p5 }
  0x46   : > { %805 = shalt.err (!%p802_p0)
}
  0x47   : > { %s1038_s2 = smov 128   ;;  %s1039_s23 = smov 8  }
  0x48   : > { %691 = dma.hbm_to_vmem [thread:$0]  (!%p1146_p13), %s223_s13, 256, %s225_s27, %s213_s19, %s1038_s2, %s1038_s2, %s1039_s23  }
  0x49   : > { %s1405_s24 = sshll.u32 %s1144_s17, 3  ;;  %s821_s10 = sshra.s32 %s264_s21, 4  ;;  %s822_s10 = int_to_ptr.hbm [resolvable:$true] %s821_s10 }
  0x4a   : > { %s257_s26 = scalar_lea.vmem [#allocation12], %s1405_s24  ;;  %s823_s20 = scalar_lea.hbm %s822_s10, 8 }
  0x4b   : > { %s265_s0 = sshll.u32 %s257_s26, 4  ;;  %p824_p3 = scmp.ne.s32.totalorder %s822_s10, %s823_s20  ;;  %s266_s0 = int_to_ptr.vmem [resolvable:$true] %s265_s0 }
  0x4c   : > { %s828_s25 = scalar_lea.hbm %s1379_s3, 16  ;;  %p829_p7 = scmp.lt.s32.totalorder %s822_s10, %s1379_s3 }
  0x4d   : > { %p826_p4 = pnand %p824_p3, %p765_p1  ;;  %p830_p8 = scmp.lt.s32.totalorder %s828_s25, %s823_s20 }
  0x4f   : > { %p827_p5 = pneg %p826_p4  ;;  %p831_p10 = por %p830_p8, %p829_p7 }
  0x51   : > { %p832_p0 = pnand %p831_p10, %p827_p5 }
  0x53   : > { %835 = shalt.err (!%p832_p0)
}
  0x54   : > { %697 = dma.hbm_to_vmem [thread:$0]  (!%p1146_p13), %s264_s21, 128, %s266_s0, %s1158_s11  }
  0x55   : > { %274 = sbr.rel (%p1183_p2) target bundleno = 160 (0xa0), region = 32  ;;  %s1220_s13 = sand.u32 (!%p1183_p2), 1, %s1027_s29  }
  0x56   : > { %s657_s1 = sshll.u32 (!%p1183_p2), %s1220_s13, 4  ;;  %s277_s17 = scalar_lea.sflag (!%p1183_p2), [#allocation8], %s1220_s13 }
  0x57   : > { %s1226_s27 = scalar_lea.vmem (!%p1183_p2), [#allocation7], %s657_s1 }
  0x5a   : > { %1002 = dma.done.wait (%p1126_p6), %s277_s17, 256  }
  0x5b   : > { %1004 = vsyncadd (%p1126_p6), %s277_s17, 4294967040  ;;  %s1391_s18 = sand.u32 1, %s1108_s8   ;;  %s1234_s11 = sshll.u32 %s1220_s13, 3 }
  0x5c   : > { %s287_s12 = scalar_lea.sflag [#allocation11], %s1391_s18  ;;  %s290_s21 = scalar_lea.vmem [#allocation10], %s1234_s11 }
  0x5d   : > { %1006 = dma.done.wait (%p1126_p6), %s287_s12, 256  }
  0x5e   : > { %1008 = vsyncadd (%p1126_p6), %s287_s12, 4294967040  ;;  %s348_s19 = sld [smem:[#allocation6 + %s1108_s8]]  ;;  %s356_s24 = sshll.u32 %s1380_s4, 4  ;;  %s357_s24 = int_to_ptr.hbm [resolvable:$true] %s356_s24 }
  0x5f   : > { %s1040_s26 = smov [#allocation2]   ;;  %s1041_s10 = smov [#allocation3]  }
  0x60   : > { %s358_s0 = sshll.u32 %s1040_s26, 4  ;;  %s373_s20 = sshll.u32 %s1041_s10, 4  ;;  %s359_s0 = int_to_ptr.vmem [resolvable:$true] %s358_s0  ;;  %s374_s20 = int_to_ptr.vmem [resolvable:$true] %s373_s20 }
  0x61   : > { %361 = dma.hbm_to_vmem [thread:$0]  %s357_s24, 256, %s359_s0, [#allocation4] }
  0x62   : > { %s879_s23 = scalar_lea.hbm %s1380_s4, 64 }
  0x64   : > { %s362_s25 = scalar_lea.hbm %s1380_s4, %s348_s19 }
  0x65   : > { %s371_s14 = sshll.u32 %s362_s25, 4  ;;  %s372_s14 = int_to_ptr.hbm [resolvable:$true] %s371_s14 }
  0x66   : > { %s875_s9 = sshra.s32 %s372_s14, 4  ;;  %s876_s9 = int_to_ptr.hbm [resolvable:$true] %s875_s9 }
  0x67   : > { %s877_s17 = scalar_lea.hbm %s876_s9, 8  ;;  %p880_p13 = scmp.lt.s32.totalorder %s876_s9, %s1380_s4 }
  0x68   : > { %p878_p6 = scmp.ne.s32.totalorder %s876_s9, %s877_s17  ;;  %p881_p1 = scmp.lt.s32.totalorder %s879_s23, %s877_s17 }
  0x6a   : > { %p882_p2 = por %p881_p1, %p880_p13 }
  0x6c   : > { %p883_p3 = pnand %p882_p2, %p878_p6 }
  0x6e   : > { %886 = shalt.err (!%p883_p3)  }
  0x6f   : > { %376 = dma.hbm_to_vmem [thread:$0]  %s372_s14, 128, %s374_s20, [#allocation4 + $0x1] }
  0x70   : > { %s300_s19 = scalar_lea.vmem [#allocation12], %s1234_s11  ;;  %s1259_s24 = scalar_lea.vmem [#allocation13], %s657_s1 }
  0x71   : > { %s340_s0 = scalar_lea.vmem [#allocation14], %s1234_s11  ;;  %s347_s10 = scalar_lea.vmem [#allocation16], %s1234_s11 }
  0x72   : > { %1009 = dma.done.wait [#allocation4], 256 }
  0x73   : > { %1010 = vsyncadd [#allocation4], 4294967040 }
  0x74   : > { %1011 = dma.done.wait [#allocation4 + $0x1], 128 }
  0x75   : > { %1012 = vsyncadd [#allocation4 + $0x1], 4294967168  ;;  %s668_s18 = sshll.u32 %s1108_s8, 3  ;;  %s1269_s1 = sshll.u32 %s340_s0, 4  ;;  %v391_v0 = vld [vmem:[%s290_s21] sm:$0xff]  ;;  %v392_v1 = vld [vmem:[#allocation3] sm:$0xff]  ;;  %s440_s1 = int_to_ptr.vmem [resolvable:$true] %s1269_s1 }
  0x76   : > { %s437_s22 = scalar_lea.hbm %s1382_s6, %s668_s18  ;;  %s1275_s17 = scalar_lea.hbm %s1383_s7, %s668_s18  ;;  %v383_v2 = vld [vmem:[%s1226_s27] sm:$0xff]  ;;  %v393_v3 = vadd.f32 %v392_v1, %v391_v0  ;;  %v385_v4 = vld [vmem:[#allocation2] sm:$0xff]  ;;  %v395_v9 = vld [vmem:[%s300_s19] sm:$0xff] }
  0x77   : > { %s441_s25 = sshll.u32 %s437_s22, 4  ;;  %s675_s12 = sshll.u32 %s1108_s8, 4  ;;  %v384_v5 = vld [vmem:[%s1226_s27 + $0x8] sm:$0xff]  ;;  %v386_v6 = vld [vmem:[#allocation2 + $0x8] sm:$0xff]  ;;  %v387_v7 = vadd.f32 %v385_v4, %v383_v2  ;;  %v397_v10 = vadd.f32 %v395_v9, %v392_v1  ;;  %s1279_s25 = int_to_ptr.hbm [resolvable:$true] %s441_s25 }
  0x78   : > { %s422_s2 = sshll.u32 %s1259_s24, 4  ;;  %s421_s20 = scalar_lea.hbm %s1381_s5, %s675_s12  ;;  %v388_v8 = vadd.f32 %v386_v6, %v384_v5  ;;  %394 = vst [vmem:[%s340_s0] sm:$0xff] %v393_v3  ;;  %s1289_s2 = int_to_ptr.vmem [resolvable:$true] %s422_s2 }
  0x79   : > { %s455_s30 = sshll.u32 %s1275_s17, 4  ;;  %s424_s18 = sshll.u32 %s421_s20, 4  ;;  %389 = vst [vmem:[%s1259_s24] sm:$0xff] %v387_v7  ;;  %s1297_s18 = int_to_ptr.hbm [resolvable:$true] %s424_s18  ;;  %s1323_s30 = int_to_ptr.hbm [resolvable:$true] %s455_s30 }
  0x7a   : > { %s1293_s22 = sshll.u32 %s347_s10, 4  ;;  %s1406_s21 = sand.u32 1, %s1108_s8   ;;  %s454_s22 = int_to_ptr.vmem [resolvable:$true] %s1293_s22 }
  0x7b   : > { %s1302_s14 = scalar_lea.sflag [#allocation15], %s1406_s21  ;;  %s913_s27 = sshra.s32 %s1279_s25, 4  ;;  %s914_s27 = int_to_ptr.hbm [resolvable:$true] %s913_s27 }
  0x7c   : > { %s915_s9 = scalar_lea.hbm %s914_s27, 8  ;;  %s919_s23 = scalar_lea.hbm %s1382_s6, 16 }
  0x7d   : > { %p916_p4 = scmp.ne.s32.totalorder %s914_s27, %s915_s9  ;;  %p920_p8 = scmp.lt.s32.totalorder %s914_s27, %s1382_s6 }
  0x7e   : > { %p921_p10 = scmp.lt.s32.totalorder %s919_s23, %s915_s9 }
  0x7f   : > { %p917_p5 = pnand %p916_p4, %p1135_p11 }
  0x80   : > { %p922_p0 = por %p921_p10, %p920_p8 }
  0x81   : > { %p918_p7 = pneg %p917_p5 }
  0x83   : > { %p923_p6 = pnand %p922_p0, %p918_p7 }
  0x85   : > { %926 = shalt.err (!%p923_p6)
}
  0x86   : > { %683 = dma.vmem_to_hbm [thread:$0]  (%p1135_p11), %s440_s1, 128, %s1279_s25, %s1302_s14   ;;  %390 = vst [vmem:[%s1259_s24 + $0x8] sm:$0xff] %v388_v8 }
  0x87   : > { %398 = vst [vmem:[%s347_s10] sm:$0xff] %v397_v10  ;;  %s400_s8 = scalar_lea.sflag [#allocation9], %s1220_s13  ;;  %s941_s20 = sshra.s32 %s1297_s18, 4  ;;  %s942_s20 = int_to_ptr.hbm [resolvable:$true] %s941_s20 }
  0x88   : > { %s943_s21 = scalar_lea.hbm %s942_s20, 16  ;;  %s947_s19 = scalar_lea.hbm %s1381_s5, 32 }
  0x89   : > { %p944_p13 = scmp.ne.s32.totalorder %s942_s20, %s943_s21  ;;  %p948_p3 = scmp.lt.s32.totalorder %s942_s20, %s1381_s5 }
  0x8a   : > { %p949_p4 = scmp.lt.s32.totalorder %s947_s19, %s943_s21 }
  0x8b   : > { %p945_p1 = pnand %p944_p13, %p1135_p11 }
  0x8c   : > { %p950_p5 = por %p949_p4, %p948_p3 }
  0x8d   : > { %p946_p2 = pneg %p945_p1 }
  0x8f   : > { %p951_p7 = pnand %p950_p5, %p946_p2 }
  0x91   : > { %954 = shalt.err (!%p951_p7)
}
  0x92   : > { %s1042_s13 = smov 128   ;;  %s1043_s11 = smov 8  }
  0x93   : > { %682 = dma.vmem_to_hbm [thread:$0]  (%p1135_p11), %s1289_s2, 256, %s1297_s18, %s400_s8, %s1042_s13, %s1042_s13, %s1043_s11  }
  0x94   : > { %s969_s10 = sshra.s32 %s1323_s30, 4  ;;  %s975_s23 = scalar_lea.hbm %s1383_s7, 16  ;;  %s970_s10 = int_to_ptr.hbm [resolvable:$true] %s969_s10 }
  0x95   : > { %s971_s25 = scalar_lea.hbm %s970_s10, 8  ;;  %p976_p6 = scmp.lt.s32.totalorder %s970_s10, %s1383_s7 }
  0x96   : > { %p972_p8 = scmp.ne.s32.totalorder %s970_s10, %s971_s25  ;;  %p977_p13 = scmp.lt.s32.totalorder %s975_s23, %s971_s25 }
  0x98   : > { %p973_p10 = pnand %p972_p8, %p1135_p11  ;;  %p978_p1 = por %p977_p13, %p976_p6 }
  0x9a   : > { %p974_p0 = pneg %p973_p10 }
  0x9c   : > { %p979_p2 = pnand %p978_p1, %p974_p0 }
  0x9e   : > { %982 = shalt.err (!%p979_p2)
}
  0x9f   : > { %684 = dma.vmem_to_hbm [thread:$0]  (%p1135_p11), %s454_s22, 128, %s1323_s30, %s1302_s14  }
  0xa0 PF: > { %s1407_s2 = sld [smem:[#allocation31_spill]]  ;;  %s467_s18 = sand.u32 1, %s1023_s28  }
  0xa1   : > { %p699_p3 = pnand %p648_p9, %p1139_p12  ;;  %s468_s8 = scalar_lea.sflag [#allocation9], %s467_s18 }
  0xa3   : > { %p700_p4 = pneg %p699_p3 }
  0xa5   : > { %1014 = dma.done.wait (%p700_p4), %s468_s8, 256  }
  0xa6   : > { %1016 = vsyncadd (%p700_p4), %s468_s8, 4294967040  ;;  %s1408_s20 = sadd.s32 4294967294, %s1407_s2  }
  0xa7   : > { %s477_s15 = sand.u32 1, %s1408_s20  }
  0xa8   : > { %s478_s21 = scalar_lea.sflag [#allocation15], %s477_s15 }
  0xa9   : > { %1018 = dma.done.wait (%p700_p4), %s478_s21, 256  }
  0xaa   : > { %1020 = vsyncadd (%p700_p4), %s478_s21, 4294967040  ;;  %s1409_s0 = sld [smem:[#allocation32_spill]]  ;;  %s1412_s28 = smov %s1027_s29 }
  0xab   : > { %s1410_s30 = sld [smem:[#allocation30_spill]] }
  0xac   : > { %s1411_s22 = sld [smem:[#allocation33_spill]] }
  0xb0   : > { %p35_p11 = scmp.ge.s32.totalorder %s1409_s0, 4  }
  0xb1   : > { %s1413_s29 = smov %s1410_s30 }
  0xb2   : > { %s1414_s30 = smov %s1411_s22  ;;  %37 = sbr.rel (!%p35_p11) target bundleno = 16 (0x10), region = 144 }
  0xb7   :  { %494 = vsyncpa [#allocation8], 1 }
  0xb8   :  { %496 = vsyncpa [#allocation8 + $0x1], 1 }
  0xb9   :  { %497 = vsyncpa [#allocation11], 1 }
  0xba   :  { %499 = vsyncpa [#allocation11 + $0x1], 1 }
  0xbb   :  { %500 = vsyncpa [#allocation9], 1 }
  0xbc   :  { %502 = vsyncpa [#allocation9 + $0x1], 1 }
  0xbd   :  { %503 = vsyncpa [#allocation15], 1 }
  0xbe   :  { %505 = vsyncpa [#allocation15 + $0x1], 1 }
  0xbf   :  { %506 = vsyncmov [#allocation4] }
  0xc2   :  { %s507_s16 = vpop.sfrf %506 }
  0xc3   :  { %p672_p9 = scmp.ne.s32.totalorder %s507_s16, 0 }
  0xc5   :  { %511 = shalt.err (%p672_p9)  }
  0xc6   :  { %513 = vsyncmov [#allocation4 + $0x1] }
  0xc9   :  { %s514_s14 = vpop.sfrf %513 }
  0xca   :  { %p673_p12 = scmp.ne.s32.totalorder %s514_s14, 0 }
  0xcc   :  { %518 = shalt.err (%p673_p12)  }

</bundles_post_ra>
